<compile_context>
chip_gen: v7x
topology: tpu7x:2x2x1
jax: 0.10.0
libtpu: 0.0.40
codegen_flags: <defaults>
</compile_context>

<pallas_src>
import jax
import jax.numpy as jnp
from jax.experimental import pallas as pl
from jax.experimental.pallas import tpu as pltpu


def _round_up(x, m):
    return ((x + m - 1) // m) * m


def _fused_pair_kernel(frames_ref, w_enc_ref, w_sep_ref, b_sep_ref, w_dec_ref, out_ref):
    # frames_ref: (TR, 2*win) bf16   row = [frame_a | frame_b]
    # w_enc_ref : (2*win, 2E) bf16   blockdiag(W_enc, W_enc)
    # w_sep_ref : (2E, 4E)   bf16    columns ordered [a0, b0, a1, b1]
    # b_sep_ref : (1, 4E)    f32     [b_spk0, b_spk0, b_spk1, b_spk1]
    # w_dec_ref : (4E, 4*win) bf16   rows [a0, b0, a1, b1] -> cols [d_a0 | d_a1 | d_b0 | d_b1]
    # out_ref   : (TR, 4*win) f32
    frames = frames_ref[...]
    enc = jnp.dot(frames, w_enc_ref[...],
                  preferred_element_type=jnp.float32)                       # (TR, 2E)
    sep = jnp.dot(enc.astype(jnp.bfloat16), w_sep_ref[...],
                  preferred_element_type=jnp.float32)
    sep = jnp.maximum(sep + b_sep_ref[...], 0.0)                            # (TR, 4E)
    enc_tiled = jnp.concatenate([enc, enc], axis=-1)                        # (TR, 4E) = [A,B,A,B]
    masked = (enc_tiled * sep).astype(jnp.bfloat16)                         # (TR, 4E)
    out_ref[...] = jnp.dot(masked, w_dec_ref[...],
                           preferred_element_type=jnp.float32)              # (TR, 4*win)


class AudioOnlyModelPallas:
    """JAX/Pallas port of AudioOnlyModel.forward (num_spks=2)."""

    def __init__(self, enc_dim=64, sr=16000, win_ms=2, key=None):
        self.num_spks = 2
        self.enc_dim = enc_dim
        self.win = int(sr * win_ms / 1000)          # 32 samples
        self.stride = self.win // 2                 # 16 samples
        assert self.win == 2 * self.stride, "overlap-add glue assumes 50% overlap"

        key = jax.random.PRNGKey(0) if key is None else key
        k1, k2, k3, k4 = jax.random.split(key, 4)
        E, win = enc_dim, self.win

        # nn.Conv1d(1, enc_dim, win, bias=False): weight (enc_dim, 1, win)
        w_enc = jax.random.normal(k1, (E, 1, win), jnp.float32) * 0.1
        self.w_enc = jnp.transpose(w_enc[:, 0, :])                       # (win, E)
        # separator stand-in: 1x1 conv enc_dim -> num_spks*enc_dim
        w_sep = jax.random.normal(k2, (2 * E, E, 1), jnp.float32) * 0.1
        self.w_sep = jnp.transpose(w_sep[:, :, 0])                       # (E, 2E)
        self.b_sep = (jax.random.normal(k3, (2 * E,), jnp.float32) * 0.01).reshape(1, -1)
        # nn.ConvTranspose1d(enc_dim, 1, win, bias=False): weight (enc_dim, 1, win)
        w_dec = jax.random.normal(k4, (E, 1, win), jnp.float32) * 0.1
        self.w_dec = w_dec[:, 0, :]                                      # (E, win)

        # ---- frame-pair block-diagonal weights, built once, cast to bf16 for the MXU ----
        We, Ws, bs, Wd = self.w_enc, self.w_sep, self.b_sep, self.w_dec
        Ws0, Ws1 = Ws[:, :E], Ws[:, E:]
        Ze = jnp.zeros((E, E), jnp.float32)
        Zw = jnp.zeros((E, win), jnp.float32)
        Zwe = jnp.zeros((win, E), jnp.float32)

        # encoder: [frame_a | frame_b] -> [enc_a | enc_b]
        self.w_enc_pair = jnp.block([[We, Zwe],
                                     [Zwe, We]]).astype(jnp.bfloat16)                # (2*win, 2E)
        # separator: output columns ordered [a0, b0, a1, b1]
        self.w_sep_pair = jnp.block([[Ws0, Ze, Ws1, Ze],
                                     [Ze, Ws0, Ze, Ws1]]).astype(jnp.bfloat16)       # (2E, 4E)
        self.b_sep_pair = jnp.concatenate(
            [bs[:, :E], bs[:, :E], bs[:, E:], bs[:, E:]], axis=-1)                   # (1, 4E) f32
        # decoder: rows [a0, b0, a1, b1] -> out cols [d_a0 | d_a1 | d_b0 | d_b1]
        self.w_dec_pair = jnp.block([[Wd, Zw, Zw, Zw],
                                     [Zw, Zw, Wd, Zw],
                                     [Zw, Wd, Zw, Zw],
                                     [Zw, Zw, Zw, Wd]]).astype(jnp.bfloat16)         # (4E, 4*win)

    # --- glue: exact port of AudioOnlyModel.pad_signal (2-D input case) ---
    def pad_signal(self, audio):
        B, nsample = audio.shape
        rest = self.win - (self.stride + nsample % self.win) % self.win
        if rest > 0:
            audio = jnp.concatenate([audio, jnp.zeros((B, rest), audio.dtype)], axis=1)
        pad_aux = jnp.zeros((B, self.stride), audio.dtype)
        audio = jnp.concatenate([pad_aux, audio, pad_aux], axis=1)
        return audio, rest

    def _frame(self, padded):
        B, T = padded.shape
        L = (T - self.win) // self.stride + 1
        idx = jnp.arange(L)[:, None] * self.stride + jnp.arange(self.win)[None, :]
        frames = padded[:, idx]                                          # (B, L, win)
        return frames.reshape(B * L, self.win), L

    def _overlap_add_and_trim(self, dec_frames, B, L, rest):
        # dec_frames: (B, 2, L, win) -> ConvTranspose1d overlap-add with 50% overlap
        first = dec_frames[..., :self.stride].reshape(B, 2, L * self.stride)
        second = dec_frames[..., self.stride:].reshape(B, 2, L * self.stride)
        zeros = jnp.zeros((B, 2, self.stride), dec_frames.dtype)
        full = (jnp.concatenate([first, zeros], axis=-1)
                + jnp.concatenate([zeros, second], axis=-1))             # (B, 2, (L-1)*stride + win)
        return full[:, :, self.stride: full.shape[-1] - (rest + self.stride)]

    def __call__(self, audio_mix):
        # audio_mix: (B, nsample) float32  (the 2-D branch of pad_signal)
        B = audio_mix.shape[0]
        padded, rest = self.pad_signal(audio_mix)
        frames, L = self._frame(padded)                                  # (B*L, win) f32

        E, win = self.enc_dim, self.win
        N = B * L
        R = (N + 1) // 2                                                 # frame pairs

        # Row tile in frame-pairs: big enough to amortize per-step overhead and fill the MXU,
        # but keep >= 2 grid steps when possible so v7x can shard across its 2 TensorCores.
        TR = min(512, _round_up(R, 8))
        if R > 8:
            TR = min(TR, max(8, _round_up((R + 1) // 2, 8)))
        Rpad = _round_up(R, TR)

        frames = jnp.pad(frames, ((0, 2 * Rpad - N), (0, 0))).astype(jnp.bfloat16)
        frame_pairs = frames.reshape(Rpad, 2 * win)                      # (Rpad, 64) bf16

        out_w = 2 * self.num_spks * win                                  # 128 -> lane-dense stores
        out = pl.pallas_call(
            _fused_pair_kernel,
            out_shape=jax.ShapeDtypeStruct((Rpad, out_w), jnp.float32),
            grid=(Rpad // TR,),
            in_specs=[
                pl.BlockSpec((TR, 2 * win), lambda i: (i, 0)),
                pl.BlockSpec((2 * win, 2 * E), lambda i: (0, 0)),
                pl.BlockSpec((2 * E, 4 * E), lambda i: (0, 0)),
                pl.BlockSpec((1, 4 * E), lambda i: (0, 0)),
                pl.BlockSpec((4 * E, out_w), lambda i: (0, 0)),
            ],
            out_specs=pl.BlockSpec((TR, out_w), lambda i: (i, 0)),
            compiler_params=pltpu.CompilerParams(dimension_semantics=("parallel",)),
        )(frame_pairs, self.w_enc_pair, self.w_sep_pair, self.b_sep_pair, self.w_dec_pair)

        # unpair: (Rpad, 128) -> (2*Rpad, 64); row f = [spk0 frame | spk1 frame]  (free reshape)
        dec = out.reshape(2 * Rpad, self.num_spks * win)[:N]
        dec = dec.reshape(B, L, 2, win)
        dec = jnp.transpose(dec, (0, 2, 1, 3))                           # (B, 2, L, win)
        return self._overlap_add_and_trim(dec, B, L, rest)               # (B, num_spks, nsample)

    # pure-JAX reference of the identical math (same bf16 casts / f32 accumulation)
    def reference(self, audio_mix):
        B = audio_mix.shape[0]
        padded, rest = self.pad_signal(audio_mix)
        frames, L = self._frame(padded)
        f = frames.astype(jnp.bfloat16)
        we = self.w_enc.astype(jnp.bfloat16)
        ws = self.w_sep.astype(jnp.bfloat16)
        wd = self.w_dec.astype(jnp.bfloat16)
        enc = jnp.dot(f, we, preferred_element_type=jnp.float32)
        sep = jnp.dot(enc.astype(jnp.bfloat16), ws, preferred_element_type=jnp.float32)
        sep = jnp.maximum(sep + self.b_sep, 0.0)
        E = self.enc_dim
        m0 = (enc * sep[:, :E]).astype(jnp.bfloat16)
        m1 = (enc * sep[:, E:]).astype(jnp.bfloat16)
        d0 = jnp.dot(m0, wd, preferred_element_type=jnp.float32)
        d1 = jnp.dot(m1, wd, preferred_element_type=jnp.float32)
        dec = jnp.stack([d0, d1], axis=1).reshape(B, L, 2, self.win)
        dec = jnp.transpose(dec, (0, 2, 1, 3))
        return self._overlap_add_and_trim(dec, B, L, rest)


if __name__ == "__main__":
    root = jax.random.PRNGKey(0)
    k_params, k_audio = jax.random.split(root)
    model = AudioOnlyModelPallas(enc_dim=64, key=k_params)

    batch, nsample = 2, 300
    audio_mix = jax.random.normal(k_audio, (batch, nsample), jnp.float32)

    out = jax.block_until_ready(model(audio_mix))
    ref = jax.block_until_ready(model.reference(audio_mix))

    assert out.shape == (batch, model.num_spks, nsample), out.shape
    assert jnp.allclose(out, ref, atol=1e-2, rtol=1e-2), float(jnp.max(jnp.abs(out - ref)))
    print("KERNEL_OK")
</pallas_src>

<mosaic_0001>
module attributes {stable_mosaic.version = 11 : i64} {
  func.func @_fused_pair_kernel(%arg0: i32, %arg1: memref<16x64xbf16, #tpu.memory_space<vmem>>, %arg2: memref<64x128xbf16, #tpu.memory_space<vmem>>, %arg3: memref<128x256xbf16, #tpu.memory_space<vmem>>, %arg4: memref<1x256xf32, #tpu.memory_space<vmem>>, %arg5: memref<256x128xbf16, #tpu.memory_space<vmem>>, %arg6: memref<16x128xf32, #tpu.memory_space<vmem>>) attributes {dimension_semantics = [#tpu.dimension_semantics<parallel>], iteration_bounds = array<i64: 2>, scalar_prefetch = 0 : i64, scratch_operands = 0 : i64, tpu.core_type = #tpu.core_type<tc>, window_params = [{transform_indices = @transform_0, window_bounds = array<i64: 16, 64>}, {pipeline_mode = #tpu.pipeline_mode<synchronous>, transform_indices = @transform_1, window_bounds = array<i64: 64, 128>}, {pipeline_mode = #tpu.pipeline_mode<synchronous>, transform_indices = @transform_2, window_bounds = array<i64: 128, 256>}, {pipeline_mode = #tpu.pipeline_mode<synchronous>, transform_indices = @transform_3, window_bounds = array<i64: 1, 256>}, {pipeline_mode = #tpu.pipeline_mode<synchronous>, transform_indices = @transform_4, window_bounds = array<i64: 256, 128>}, {transform_indices = @transform_5, window_bounds = array<i64: 16, 128>}]} {
    %c0 = arith.constant 0 : index
    %c0_0 = arith.constant 0 : index
    %0 = vector.load %arg1[%c0, %c0_0] : memref<16x64xbf16, #tpu.memory_space<vmem>>, vector<16x64xbf16>
    %c0_1 = arith.constant 0 : index
    %c0_2 = arith.constant 0 : index
    %1 = vector.load %arg2[%c0_1, %c0_2] : memref<64x128xbf16, #tpu.memory_space<vmem>>, vector<64x128xbf16>
    %cst = arith.constant dense<0.000000e+00> : vector<16x128xf32>
    %2 = tpu.matmul %0, %1, %cst {dimension_numbers = #tpu.dot_dimension_numbers<[1], [0], [0], [1], [0, 0, 1, 1], [], []>} : vector<16x64xbf16>, vector<64x128xbf16>, vector<16x128xf32> -> vector<16x128xf32>
    %3 = arith.truncf %2 : vector<16x128xf32> to vector<16x128xbf16>
    %c0_3 = arith.constant 0 : index
    %c0_4 = arith.constant 0 : index
    %4 = vector.load %arg3[%c0_3, %c0_4] : memref<128x256xbf16, #tpu.memory_space<vmem>>, vector<128x256xbf16>
    %cst_5 = arith.constant dense<0.000000e+00> : vector<16x256xf32>
    %5 = tpu.matmul %3, %4, %cst_5 {dimension_numbers = #tpu.dot_dimension_numbers<[1], [0], [0], [1], [0, 0, 1, 1], [], []>} : vector<16x128xbf16>, vector<128x256xbf16>, vector<16x256xf32> -> vector<16x256xf32>
    %c0_6 = arith.constant 0 : index
    %c0_7 = arith.constant 0 : index
    %6 = vector.load %arg4[%c0_6, %c0_7] : memref<1x256xf32, #tpu.memory_space<vmem>>, vector<1x256xf32>
    %7 = vector.broadcast %6 : vector<1x256xf32> to vector<16x256xf32>
    %8 = arith.addf %5, %7 : vector<16x256xf32>
    %cst_8 = arith.constant 0.000000e+00 : f32
    %9 = vector.broadcast %cst_8 : f32 to vector<16x256xf32>
    %10 = arith.maximumf %8, %9 : vector<16x256xf32>
    %11 = tpu.concatenate %2, %2 in 1 : vector<16x128xf32>, vector<16x128xf32> -> vector<16x256xf32>
    %12 = arith.mulf %11, %10 : vector<16x256xf32>
    %13 = arith.truncf %12 : vector<16x256xf32> to vector<16x256xbf16>
    %c0_9 = arith.constant 0 : index
    %c0_10 = arith.constant 0 : index
    %14 = vector.load %arg5[%c0_9, %c0_10] : memref<256x128xbf16, #tpu.memory_space<vmem>>, vector<256x128xbf16>
    %cst_11 = arith.constant dense<0.000000e+00> : vector<16x128xf32>
    %15 = tpu.matmul %13, %14, %cst_11 {dimension_numbers = #tpu.dot_dimension_numbers<[1], [0], [0], [1], [0, 0, 1, 1], [], []>} : vector<16x256xbf16>, vector<256x128xbf16>, vector<16x128xf32> -> vector<16x128xf32>
    %c0_12 = arith.constant 0 : index
    %c0_13 = arith.constant 0 : index
    %16 = vector.load %arg6[%c0_12, %c0_13] : memref<16x128xf32, #tpu.memory_space<vmem>>, vector<16x128xf32>
    tpu.vector_store %arg6[%c0_12, %c0_13], %15 {strides = array<i32>} : memref<16x128xf32, #tpu.memory_space<vmem>>, vector<16x128xf32>,
    return
  }
  func.func @transform_0(%arg0: i32) -> (i32, i32) {
    %c0_i32 = arith.constant 0 : i32
    %c0_i32_0 = arith.constant 0 : i32
    return %arg0, %c0_i32 : i32, i32
  }
  func.func @transform_1(%arg0: i32) -> (i32, i32) {
    %c0_i32 = arith.constant 0 : i32
    %c0_i32_0 = arith.constant 0 : i32
    %c0_i32_1 = arith.constant 0 : i32
    return %c0_i32, %c0_i32_0 : i32, i32
  }
  func.func @transform_2(%arg0: i32) -> (i32, i32) {
    %c0_i32 = arith.constant 0 : i32
    %c0_i32_0 = arith.constant 0 : i32
    %c0_i32_1 = arith.constant 0 : i32
    return %c0_i32, %c0_i32_0 : i32, i32
  }
  func.func @transform_3(%arg0: i32) -> (i32, i32) {
    %c0_i32 = arith.constant 0 : i32
    %c0_i32_0 = arith.constant 0 : i32
    %c0_i32_1 = arith.constant 0 : i32
    return %c0_i32, %c0_i32_0 : i32, i32
  }
  func.func @transform_4(%arg0: i32) -> (i32, i32) {
    %c0_i32 = arith.constant 0 : i32
    %c0_i32_0 = arith.constant 0 : i32
    %c0_i32_1 = arith.constant 0 : i32
    return %c0_i32, %c0_i32_0 : i32, i32
  }
  func.func @transform_5(%arg0: i32) -> (i32, i32) {
    %c0_i32 = arith.constant 0 : i32
    %c0_i32_0 = arith.constant 0 : i32
    return %arg0, %c0_i32 : i32, i32
  }
}

</mosaic_0001>

<bundles_post_ra>
// kernel: tpu_custom_call.1
= control target key start
LH: loop header
LB: loop body
LE: loop exit
PB: predicated region body
PF: predicated region fallthrough
CT: control target
= control target key end

     0   :  { %10 = vsyncpa [#allocation3], 0  ;;  %s1556_s0 = inlined_call_operand.hbm [shape: bf16[32,64], index: 0, kind: input, shape index: {}]   ;;  %s1557_s1 = inlined_call_operand.hbm [shape: bf16[64,128], index: 1, kind: input, shape index: {}]   ;;  %s1558_s2 = inlined_call_operand.hbm [shape: bf16[128,256], index: 2, kind: input, shape index: {}]   ;;  %s1559_s3 = inlined_call_operand.vmem [shape: f32[1,256], index: 3, kind: input, shape index: {}]   ;;  %s1560_s4 = inlined_call_operand.hbm [shape: bf16[256,128], index: 4, kind: input, shape index: {}]   ;;  %s1561_s5 = inlined_call_operand.hbm [shape: f32[32,128], index: 5, kind: output, shape index: {}]  }
   0x1   :  { %12 = vsyncpa [#allocation3 + $0x1], 0 }
   0x2   :  { %13 = vsyncpa [#allocation6], 0 }
   0x3   :  { %14 = vsyncpa [#allocation9], 0 }
   0x4   :  { %15 = vsyncpa [#allocation4], 0 }
   0x5   :  { %17 = vsyncpa [#allocation4 + $0x1], 0  ;;  %s1287_s18 = smov 0   ;;  %s1289_s19 = smov 0  }
   0x6   :  { %s1291_s20 = smov 0   ;;  %s1293_s21 = smov 0  }
   0x7 LB: > { %s1308_s22 = sadd.s32 4294967295, %s1241_s21   ;;  %s823_s23 = sadd.s32 4294967294, %s1241_s21   ;;  %s1241_s21 = sphi %s1293_s21, %s1590_s21   ;;  %s1237_s20 = sphi %s1291_s20, %s1589_s20   ;;  %s1233_s19 = sphi %s1289_s19, %s1588_s19   ;;  %s1229_s18 = sphi %s1287_s18, %s1587_s18  }
   0x8   : > { %p43_p0 = scmp.ne.s32.totalorder %s1233_s19, %s1229_s18  ;;  %p1562_p1 = scmp.eq.s32.totalorder %s1308_s22, 0 }
   0x9   : > { %p157_p3 = scmp.eq.s32.totalorder %s823_s23, 1  ;;  %p824_p5 = scmp.ge.s32.totalorder %s1241_s21, 1 }
   0xa   : > { %p1317_p4 = por %p1562_p1, %p43_p0  ;;  %p164_p7 = scmp.lt.s32.totalorder %s1241_s21, 3 }
   0xb   : > { %p1322_p6 = por %p157_p3, %p43_p0  ;;  %s1243_s27 = smov [#allocation5]  }
   0xc   : > { %s1569_s24 = scalar_select %p1317_p4, 1, 0 }
   0xd   : > { %s1570_s25 = scalar_select %p1322_p6, 1, 0 }
   0xe   : > { %p1327_p8 = pnand %p824_p5, %p164_p7  ;;  %s176_s28 = sshll.u32 %s1243_s27, 4  ;;  %s1331_s28 = int_to_ptr.vmem [resolvable:$true] %s176_s28 }
   0xf   : > { %s1244_s30 = smov [#allocation7]   ;;  %s1053_s9 = scalar_lea.hbm %s1557_s1, 512 }
  0x10   : > { %s1571_s26 = scalar_select %p1327_p8, 1, 0 }
  0x11   : > { %p938_p9 = pneg %p1327_p8  ;;  %s189_s6 = sshll.u32 %s1244_s30, 4  ;;  %s1342_s6 = int_to_ptr.vmem [resolvable:$true] %s189_s6 }
  0x12   : > { %p1054_p12 = scmp.ne.s32.totalorder %s1557_s1, %s1053_s9  ;;  %p1060_p5 = scmp.lt.u32.totalorder %s1053_s9, %s1557_s1 }
  0x13   : > { %p1338_p11 = pnand %p938_p9, %p1562_p1 }
  0x15   : > { %p1352_p13 = pneg %p1338_p11 }
  0x17   : > { %p1056_p0 = pnand %p1352_p13, %p1054_p12 }
  0x19   : > { %p1057_p3 = pneg %p1056_p0 }
  0x1b   : > { %p1062_p7 = pnand %p1060_p5, %p1057_p3 }
  0x1d   : > { %1065 = shalt.err (!%p1062_p7)
}
  0x1e   : > { %s1066_s15 = scalar_lea.vmem %s1331_s28, 512  ;;  %p1074_p2 = scmp.lt.s32.totalorder %s1331_s28, %s1331_s28 }
  0x1f   : > { %p1067_p9 = scmp.ne.s32.totalorder %s1331_s28, %s1066_s15  ;;  %p1075_p6 = scmp.lt.s32.totalorder %s1066_s15, %s1066_s15 }
  0x21   : > { %p1069_p10 = pnand %p1067_p9, %p1352_p13  ;;  %p1076_p12 = por %p1075_p6, %p1074_p2 }
  0x23   : > { %p1070_p1 = pneg %p1069_p10 }
  0x25   : > { %p1077_p0 = pnand %p1076_p12, %p1070_p1 }
  0x27   : > { %1080 = shalt.err (!%p1077_p0)
}
  0x28   : > { %s1563_s16 = smov 64   ;;  %s1565_s17 = smov 4  }
  0x29   : > { %941 = dma.hbm_to_vmem [thread:$0]  (!%p1338_p11), %s1557_s1, 512, %s1331_s28, [#allocation6], %s1563_s16, %s1563_s16, %s1565_s17  }
  0x2a   : > { %s1081_s8 = scalar_lea.hbm %s1558_s2, 2048 }
  0x2b   : > { %p1082_p1 = scmp.ne.s32.totalorder %s1558_s2, %s1081_s8  ;;  %p1088_p10 = scmp.lt.u32.totalorder %s1081_s8, %s1558_s2 }
  0x2d   : > { %p1084_p2 = pnand %p1082_p1, %p1352_p13 }
  0x2f   : > { %p1085_p6 = pneg %p1084_p2 }
  0x31   : > { %p1090_p3 = pnand %p1088_p10, %p1085_p6 }
  0x33   : > { %1093 = shalt.err (!%p1090_p3)
}
  0x34   : > { %s1094_s28 = scalar_lea.vmem %s1342_s6, 2048  ;;  %p1102_p12 = scmp.lt.s32.totalorder %s1342_s6, %s1342_s6 }
  0x35   : > { %p1095_p5 = scmp.ne.s32.totalorder %s1342_s6, %s1094_s28  ;;  %p1103_p0 = scmp.lt.s32.totalorder %s1094_s28, %s1094_s28 }
  0x37   : > { %p1097_p7 = pnand %p1095_p5, %p1352_p13  ;;  %p1104_p1 = por %p1103_p0, %p1102_p12 }
  0x39   : > { %p1098_p9 = pneg %p1097_p7 }
  0x3b   : > { %p1105_p2 = pnand %p1104_p1, %p1098_p9 }
  0x3d   : > { %1108 = shalt.err (!%p1105_p2)
}
  0x3e   : > { %s1247_s14 = smov 128   ;;  %s1248_s15 = smov 8  }
  0x3f   : > { %944 = dma.hbm_to_vmem [thread:$0]  (!%p1338_p11), %s1558_s2, 2048, %s1342_s6, [#allocation6], %s1247_s14, %s1247_s14, %s1248_s15  }
  0x40   : > { %s1249_s30 = smov [#allocation8]   ;;  %s1400_s8 = sadd.s32 1, %s1241_s21  }
  0x41   : > { %s205_s7 = sshll.u32 %s1249_s30, 4  ;;  %s1109_s11 = scalar_lea.hbm %s1560_s4, 2048  ;;  %s206_s7 = int_to_ptr.vmem [resolvable:$true] %s205_s7 }
  0x42   : > { %p1110_p6 = scmp.ne.s32.totalorder %s1560_s4, %s1109_s11  ;;  %p1116_p5 = scmp.lt.u32.totalorder %s1109_s11, %s1560_s4 }
  0x44   : > { %p1112_p10 = pnand %p1110_p6, %p1352_p13 }
  0x46   : > { %p1113_p3 = pneg %p1112_p10 }
  0x48   : > { %p1118_p7 = pnand %p1116_p5, %p1113_p3 }
  0x4a   : > { %1121 = shalt.err (!%p1118_p7)
}
  0x4b   : > { %s1122_s6 = scalar_lea.vmem %s206_s7, 2048  ;;  %p1130_p1 = scmp.lt.s32.totalorder %s206_s7, %s206_s7 }
  0x4c   : > { %p1123_p9 = scmp.ne.s32.totalorder %s206_s7, %s1122_s6  ;;  %p1131_p2 = scmp.lt.s32.totalorder %s1122_s6, %s1122_s6 }
  0x4e   : > { %p1125_p12 = pnand %p1123_p9, %p1352_p13  ;;  %p1132_p4 = por %p1131_p2, %p1130_p1 }
  0x50   : > { %p1126_p0 = pneg %p1125_p12 }
  0x52   : > { %p1133_p8 = pnand %p1132_p4, %p1126_p0 }
  0x54   : > { %1136 = shalt.err (!%p1133_p8)
}
  0x55   : > { %s1574_s14 = smov 4   ;;  %s1575_s15 = smov 64  }
  0x56   : > { %947 = dma.hbm_to_vmem [thread:$0]  (!%p1338_p11), %s1560_s4, 2048, %s206_s7, [#allocation9], %s1575_s15, %s1575_s15, %s1574_s14  }
  0x57   : > { %s27_s12 = ssub.s32 %s1241_s21, %s1400_s8  ;;  %s30_s29 = sadd.s32 1, %s1237_s20 }
  0x58   : > { %p28_p4 = scmp.eq.s32.totalorder %s27_s12, 0  ;;  %p37_p8 = scmp.ne.s32.totalorder %s1237_s20, %s1233_s19 }
  0x59   : > { %p38_p13 = scmp.eq.s32.totalorder %s1241_s21, 0  ;;  %p959_p6 = scmp.lt.s32.totalorder %s1241_s21, 2 }
  0x5a   : > { %s1431_s23 = scalar_select %p28_p4, %s1237_s20, %s30_s29  }
  0x5b   : > { %p39_p10 = por %p38_p13, %p37_p8  ;;  %p1576_p3 = scmp.eq.s32.totalorder %s1308_s22, 1 }
  0x5c   : > { %s219_s30 = sand.u32 1, %s1237_s20   ;;  %s881_s9 = sshll.u32 %s1241_s21, 7 }
  0x5d   : > { %p1435_p5 = por %p1576_p3, %p37_p8  ;;  %s829_s10 = sshll.u32 %s219_s30, 3 }
  0x5e   : > { %s1444_s7 = scalar_lea.hbm %s1556_s0, %s881_s9  ;;  %s223_s28 = scalar_lea.vmem [#allocation2], %s829_s10 }
  0x5f   : > { %s230_s6 = sshll.u32 %s223_s28, 4  ;;  %p1446_p11 = pnand %p959_p6, %p39_p10  ;;  %s1450_s6 = int_to_ptr.vmem [resolvable:$true] %s230_s6 }
  0x60   : > { %s1452_s17 = scalar_lea.sflag [#allocation3], %s219_s30  ;;  %s1137_s12 = scalar_lea.hbm %s1444_s7, 128 }
  0x61   : > { %p1138_p7 = scmp.ne.s32.totalorder %s1444_s7, %s1137_s12  ;;  %p1139_p9 = pneg %p1446_p11 }
  0x62   : > { %s1142_s10 = scalar_lea.hbm %s1556_s0, 256  ;;  %p1143_p1 = scmp.lt.u32.totalorder %s1444_s7, %s1556_s0 }
  0x63   : > { %p1140_p12 = pnand %p1139_p9, %p1138_p7  ;;  %p1144_p2 = scmp.lt.u32.totalorder %s1142_s10, %s1137_s12 }
  0x64   : > { %p1146_p8 = scmp.lt.u32.totalorder %s1137_s12, %s1444_s7 }
  0x65   : > { %p1141_p0 = pneg %p1140_p12  ;;  %p1145_p4 = por %p1144_p2, %p1143_p1 }
  0x67   : > { %p1147_p13 = por %p1146_p8, %p1145_p4 }
  0x69   : > { %p1148_p6 = pnand %p1147_p13, %p1141_p0 }
  0x6b   : > { %1151 = shalt.err (!%p1148_p6)
}
  0x6c   : > { %s1152_s30 = scalar_lea.vmem %s1450_s6, 128  ;;  %s1250_s28 = smov [#allocation2]  }
  0x6d   : > { %p1153_p10 = scmp.ne.s32.totalorder %s1450_s6, %s1152_s30  ;;  %s1157_s29 = sshll.u32 %s1250_s28, 4  ;;  %s1158_s29 = int_to_ptr.vmem [resolvable:$false] %s1157_s29 }
  0x6e   : > { %s1159_s9 = scalar_lea.vmem %s1158_s29, 256  ;;  %p1160_p12 = scmp.lt.s32.totalorder %s1450_s6, %s1158_s29 }
  0x6f   : > { %p1155_p3 = pnand %p1153_p10, %p1139_p9  ;;  %p1161_p1 = scmp.lt.s32.totalorder %s1159_s9, %s1152_s30 }
  0x71   : > { %p1156_p7 = pneg %p1155_p3  ;;  %p1162_p2 = por %p1161_p1, %p1160_p12 }
  0x73   : > { %p1163_p4 = pnand %p1162_p2, %p1156_p7 }
  0x75   : > { %1166 = shalt.err (!%p1163_p4)
}
  0x76   : > { %951 = dma.hbm_to_vmem [thread:$0]  (!%p1446_p11), %s1444_s7, 128, %s1450_s6, %s1452_s17, %s1575_s15, %s1575_s15, %s1574_s14  }
  0x77   : > { %p1579_p9 = scmp.ne.s32.totalorder %s1571_s26, 0 }
  0x78   : > { %s1486_s12 = sand.u32 (!%p1579_p9), 1, %s1233_s19   ;;  %p1580_p0 = scmp.ne.s32.totalorder (!%p1579_p9), %s1569_s24, 0 }
  0x79   : > { %242 = sbr.rel (%p1579_p9) target bundleno = 824 (0x338), region = 40  ;;  %s833_s10 = sshll.u32 (!%p1579_p9), %s1486_s12, 3 }
  0x7a   : > { %s245_s11 = scalar_lea.sflag (!%p1579_p9), [#allocation3], %s1486_s12  ;;  %s248_s13 = scalar_lea.vmem (!%p1579_p9), [#allocation2], %s833_s10 }
  0x80   : > { %1212 = dma.done.wait (%p1580_p0), %s245_s11, 128  }
  0x81   : > { %1214 = vsyncadd (%p1580_p0), %s245_s11, 4294967168  ;;  %p1581_p8 = scmp.eq.s32.totalorder %s1308_s22, 0 }
  0x83   : > { %1216 = dma.done.wait (%p1581_p8), [#allocation6], 2560   ;;  %p1582_p11 = pmov %p1581_p8 }
  0x84   : > { %p1583_p13 = pmov %p1581_p8 }
  0x85   : > { %1218 = vsyncadd (%p1582_p11), [#allocation6], 4294964736 }
  0x86   : > { %1220 = dma.done.wait (%p1583_p13), [#allocation9], 2048   ;;  %p1584_p6 = pmov %p1581_p8 }
  0x87   : > { %v1251_v0 = vmov 0.0   ;;  %vm1252_vm0 = vmmov 0   ;;  %v1008_v1 = vld [vmem:[#allocation5] sm:$0xff]   ;;  %v1009_v2 = vld [vmem:[#allocation5 + $0x8] sm:$0xff]   ;;  %v1010_v3 = vld [vmem:[#allocation5 + $0x10] sm:$0xff]   ;;  %vm329_vm1 = vcmask 523264   ;;  %v393_v44 = vlaneseq }
  0x88   : > { %1222 = vsyncadd (%p1584_p6), [#allocation9], 4294965248  ;;  %910 = vmatprep.subr.bf16.mxu0 %v1251_v0  ;;  %918 = vmatprep.mubr.msk.bf16.mxu0 %vm1252_vm0, %v1251_v0  ;;  %v1013_v4 = vld [vmem:[#allocation7 + $0x4] ss:$8 sps:$4 sm:$0xff]   ;;  %v1015_v5 = vld [vmem:[#allocation7] ss:$8 sps:$4 sm:$0xff]  }
  0x89   : > { %911 = vmatpush3.bf16.msra.mxu0 %v1008_v1  ;;  %483 = vmatprep.subr.bf16.mxu1 %v1013_v4  ;;  %v1016_v6 = vld [vmem:[#allocation7 + $0x14] ss:$8 sps:$4 sm:$0xff]   ;;  %v1018_v7 = vld [vmem:[#allocation7 + $0x10] ss:$8 sps:$4 sm:$0xff]   ;;  %v1019_v8 = vld [vmem:[#allocation7 + $0x24] ss:$8 sps:$4 sm:$0xff]  }
  0x8a   : > { %912 = vmatprep.subr.bf16.mxu0 %v1251_v0  ;;  %484 = vmatpush1.bf16.msra.mxu1 %v1015_v5  ;;  %v1011_v9 = vld [vmem:[#allocation5 + $0x18] sm:$0xff]   ;;  %v1021_v11 = vld [vmem:[#allocation7 + $0x20] ss:$8 sps:$4 sm:$0xff]   ;;  %v1025_v14 = vld [vmem:[#allocation7 + $0x44] ss:$8 sps:$4 sm:$0xff]   ;;  %v1253_v22 = vmov 0  }
  0x8b   : > { %485 = vmatprep.subr.bf16.mxu1 %v1016_v6  ;;  %v1012_v10 = vld [vmem:[%s248_s13] sm:$0xff]   ;;  %v1027_v15 = vld [vmem:[#allocation7 + $0x40] ss:$8 sps:$4 sm:$0xff]   ;;  %v1031_v18 = vld [vmem:[#allocation7 + $0x64] ss:$8 sps:$4 sm:$0xff]   ;;  %515 = vmatprep.mubr.bf16.mxu1 %v1253_v22  ;;  %v394_v45 = vshrl.u32 %v393_v44, 7 }
  0x8c   : > { %v1022_v12 = vld [vmem:[#allocation7 + $0x34] ss:$8 sps:$4 sm:$0xff]   ;;  %v1024_v13 = vld [vmem:[#allocation7 + $0x30] ss:$8 sps:$4 sm:$0xff]   ;;  %v1033_v19 = vld [vmem:[#allocation7 + $0x60] ss:$8 sps:$4 sm:$0xff]  }
  0x8d   : > { %913 = vmatpush3.bf16.msra.mxu0 %v1009_v2  ;;  %v1028_v16 = vld [vmem:[#allocation7 + $0x54] ss:$8 sps:$4 sm:$0xff]   ;;  %v1030_v17 = vld [vmem:[#allocation7 + $0x50] ss:$8 sps:$4 sm:$0xff]   ;;  %v1037_v23 = vld [vmem:[#allocation8 + $0x40] sm:$0xff]   ;;  %v395_v46 = vsub.s32 0, %v394_v45 }
  0x8e   : > { %914 = vmatprep.subr.bf16.mxu0 %v1251_v0  ;;  %486 = vmatpush1.bf16.msra.mxu1 %v1018_v7  ;;  %v1034_v20 = vld [vmem:[#allocation7 + $0x74] ss:$8 sps:$4 sm:$0xff]   ;;  %v1036_v21 = vld [vmem:[#allocation7 + $0x70] ss:$8 sps:$4 sm:$0xff]   ;;  %v1038_v24 = vld [vmem:[#allocation8] sm:$0xff]   ;;  %v399_v48 = vsub.s32 1, %v394_v45 }
  0x8f   : > { %487 = vmatprep.subr.bf16.mxu1 %v1019_v8  ;;  %v1039_v25 = vld [vmem:[#allocation8 + $0x48] sm:$0xff]   ;;  %v1041_v27 = vld [vmem:[#allocation8 + $0x50] sm:$0xff]   ;;  %v1043_v29 = vld [vmem:[#allocation8 + $0x58] sm:$0xff]   ;;  %s837_s14 = sshll.u32 %s1486_s12, 4  ;;  %s882_s6 = sshll.u32 %s1308_s22, 8 }
  0x90   : > { %v1040_v26 = vld [vmem:[#allocation8 + $0x8] sm:$0xff]   ;;  %v1042_v28 = vld [vmem:[#allocation8 + $0x10] sm:$0xff]   ;;  %v1044_v30 = vld [vmem:[#allocation8 + $0x18] sm:$0xff]   ;;  %s286_s15 = scalar_lea.vmem [#allocation10], %s837_s14  ;;  %s1512_s30 = scalar_lea.hbm %s1561_s5, %s882_s6 }
  0x91   : > { %915 = vmatpush3.bf16.msra.mxu0 %v1010_v3  ;;  %v1045_v31 = vld [vmem:[#allocation8 + $0x60] sm:$0xff]   ;;  %v1047_v38 = vld [vmem:[#allocation8 + $0x68] sm:$0xff]   ;;  %v1049_v40 = vld [vmem:[#allocation8 + $0x70] sm:$0xff]   ;;  %s721_s7 = sshll.u32 %s286_s15, 4  ;;  %s708_s28 = scalar_lea.sflag [#allocation4], %s1486_s12  ;;  %s1507_s7 = int_to_ptr.vmem [resolvable:$true] %s721_s7 }
  0x92   : > { %916 = vmatprep.subr.bf16.mxu0 %v1251_v0  ;;  %488 = vmatpush1.bf16.msra.mxu1 %v1021_v11  ;;  %v1046_v32 = vld [vmem:[#allocation8 + $0x20] sm:$0xff]   ;;  %v1048_v39 = vld [vmem:[#allocation8 + $0x28] sm:$0xff]   ;;  %v1050_v41 = vld [vmem:[#allocation8 + $0x30] sm:$0xff]   ;;  %s1167_s29 = scalar_lea.vmem %s1507_s7, 256  ;;  %s1254_s22 = smov [#allocation10]  }
  0x93   : > { %489 = vmatprep.subr.bf16.mxu1 %v1022_v12  ;;  %v1051_v42 = vld [vmem:[#allocation8 + $0x78] sm:$0xff]   ;;  %v391_v47 = vld [vmem:[%s1559_s3] sm:$0x3]  ;;  %p1168_p10 = scmp.ne.s32.totalorder %s1507_s7, %s1167_s29  ;;  %s1171_s9 = sshll.u32 %s1254_s22, 4  ;;  %s1172_s9 = int_to_ptr.vmem [resolvable:$false] %s1171_s9 }
  0x94   : > { %v1052_v43 = vld [vmem:[#allocation8 + $0x38] sm:$0xff]   ;;  %v396_v49 = vrot.slane %v391_v47, %v395_v46  ;;  %v400_v50 = vrot.slane %v391_v47, %v399_v48  ;;  %s1173_s10 = scalar_lea.vmem %s1172_s9, 512  ;;  %p1174_p12 = scmp.lt.s32.totalorder %s1507_s7, %s1172_s9 }
  0x95   : > { %917 = vmatpush3.bf16.msra.mxu0 %v1011_v9  ;;  %p1169_p3 = pnand %p1168_p10, %p1435_p5  ;;  %p1175_p1 = scmp.lt.s32.totalorder %s1173_s10, %s1167_s29 }
  0x96   : > { %490 = vmatpush1.bf16.msra.mxu1 %v1024_v13  ;;  %888 = vmatprep.subr.bf16.mxu0 %v1037_v23 }
  0x97   : > { %491 = vmatprep.subr.bf16.mxu1 %v1025_v14  ;;  %p1170_p7 = pneg %p1169_p3  ;;  %p1176_p2 = por %p1175_p1, %p1174_p12 }
  0x98   : > { %919 = vmatmul.mubr.msk.bf16.vlgmr.msra.gmra.mrb[0].mxu0 %vm329_vm1, %v1012_v10 }
  0x99   : > { %889 = vmatpush3.bf16.msra.mxu0 %v1038_v24  ;;  %p1177_p4 = pnand %p1176_p2, %p1170_p7 }
  0x9a   : > { %492 = vmatpush1.bf16.msra.mxu1 %v1027_v15  ;;  %890 = vmatprep.subr.bf16.mxu0 %v1039_v25 }
  0x9b   : > { %493 = vmatprep.subr.bf16.mxu1 %v1028_v16 }
  0x9d   : > { %891 = vmatpush3.bf16.msra.mxu0 %v1040_v26 }
  0x9e   : > { %494 = vmatpush1.bf16.msra.mxu1 %v1030_v17  ;;  %892 = vmatprep.subr.bf16.mxu0 %v1041_v27 }
  0x9f   : > { %495 = vmatprep.subr.bf16.mxu1 %v1031_v18 }
  0xa1   : > { %893 = vmatpush3.bf16.msra.mxu0 %v1042_v28 }
  0xa2   : > { %496 = vmatpush1.bf16.msra.mxu1 %v1033_v19  ;;  %894 = vmatprep.subr.bf16.mxu0 %v1043_v29 }
  0xa3   : > { %497 = vmatprep.subr.bf16.mxu1 %v1034_v20 }
  0xa5   : > { %895 = vmatpush3.bf16.msra.mxu0 %v1044_v30 }
  0xa6   : > { %498 = vmatpush1.bf16.msra.mxu1 %v1036_v21  ;;  %896 = vmatprep.subr.bf16.mxu0 %v1045_v31 }
  0xa9   : > { %897 = vmatpush3.bf16.msra.mxu0 %v1046_v32 }
  0xaa   : > { %898 = vmatprep.subr.bf16.mxu0 %v1047_v38 }
  0xad   : > { %899 = vmatpush3.bf16.msra.mxu0 %v1048_v39 }
  0xae   : > { %900 = vmatprep.subr.bf16.mxu0 %v1049_v40 }
  0xb1   : > { %901 = vmatpush3.bf16.msra.mxu0 %v1050_v41 }
  0xb2   : > { %902 = vmatprep.subr.bf16.mxu0 %v1051_v42 }
  0xb5   : > { %903 = vmatpush3.bf16.msra.mxu0 %v1052_v43 }
 0x16b   : > { %v367_v33 = vpop.f32.mrb[0].mxu0 }
 0x16c   : > { %v920_v34 = vpop.f32.mrb[1].mxu0 }
 0x16d   : > { %v370_v35 = vpop.f32.mrb[2].mxu0 }
 0x16e   : > { %v374_v36 = vpack.c.bf16 %v370_v35, %v367_v33  ;;  %v921_v37 = vpop.f32.mrb[3].mxu0 }
 0x170   : > { %516 = vmatmul.mubr.bf16.vlgmr.msra.gmra.mrb[0].mxu1 %v374_v36 }
 0x243   : > { %v517_v51 = vpop.f32.mrb[0].mxu1 }
 0x244   : > { %v518_v52 = vadd.f32 %v517_v51, %v396_v49  ;;  %v519_v53 = vpop.f32.mrb[1].mxu1 }
 0x245   : > { %v520_v54 = vadd.f32 %v519_v53, %v400_v50  ;;  %v521_v55 = vpop.f32.mrb[2].mxu1 }
 0x246   : > { %v526_v56 = vmax.f32 %v518_v52, 0.0  ;;  %v522_v57 = vadd.f32 %v521_v55, %v396_v49  ;;  %v523_v58 = vpop.f32.mrb[3].mxu1 }
 0x247   : > { %v527_v59 = vmax.f32 %v520_v54, 0.0  ;;  %v524_v60 = vadd.f32 %v523_v58, %v400_v50 }
 0x248   : > { %v530_v61 = vmul.f32 %v526_v56, %v367_v33  ;;  %v528_v62 = vmax.f32 %v522_v57, 0.0 }
 0x249   : > { %v531_v63 = vmul.f32 %v527_v59, %v367_v33  ;;  %v529_v0 = vmax.f32 %v524_v60, 0.0 }
 0x24a   : > { %v532_v1 = vmul.f32 %v528_v62, %v370_v35 }
 0x24b   : > { %v533_v2 = vmul.f32 %v529_v0, %v370_v35 }
 0x24c   : > { %v534_v3 = vpack.c.bf16 %v532_v1, %v530_v61 }
 0x24d   : > { %v535_v4 = vpack.c.bf16 %v533_v2, %v531_v63 }
 0x24f   : > { %696 = vmatprep.mubr.bf16.mxu0 %v535_v4 }
 0x250   : > { %697 = vmatmul.mubr.bf16.vlgmr.msra.gmra.mrb[4].mxu0 %v534_v3 }
 0x323   : > { %v904_v5 = vpop.f32.mrb[4].mxu0 }
 0x324   : > { %v905_v6 = vpop.f32.mrb[5].mxu0 }
 0x325   : > { %v906_v7 = vadd.f32 %v905_v6, %v904_v5  ;;  %v907_v8 = vpop.f32.mrb[6].mxu0 }
 0x326   : > { %v908_v9 = vpop.f32.mrb[7].mxu0 }
 0x327   : > { %705 = vst [vmem:[%s286_s15] sm:$0xff] %v906_v7  ;;  %v909_v10 = vadd.f32 %v908_v9, %v907_v8 }
 0x329   : > { %706 = vst [vmem:[%s286_s15 + $0x8] sm:$0xff] %v909_v10 }
 0x32a   : > { %1180 = shalt.err (!%p1177_p4)
}
 0x32b   : > { %s1181_s11 = scalar_lea.hbm %s1512_s30, 256  ;;  %s1185_s26 = scalar_lea.hbm %s1561_s5, 512 }
 0x32c   : > { %p1182_p9 = scmp.ne.s32.totalorder %s1512_s30, %s1181_s11  ;;  %p1186_p11 = scmp.lt.u32.totalorder %s1512_s30, %s1561_s5 }
 0x32d   : > { %p1187_p13 = scmp.lt.u32.totalorder %s1185_s26, %s1181_s11  ;;  %p1189_p10 = scmp.lt.u32.totalorder %s1181_s11, %s1512_s30 }
 0x32e   : > { %p1183_p0 = pnand %p1182_p9, %p1435_p5 }
 0x32f   : > { %p1188_p6 = por %p1187_p13, %p1186_p11 }
 0x330   : > { %p1184_p8 = pneg %p1183_p0 }
 0x331   : > { %p1190_p3 = por %p1189_p10, %p1188_p6 }
 0x333   : > { %p1191_p7 = pnand %p1190_p3, %p1184_p8 }
 0x335   : > { %1194 = shalt.err (!%p1191_p7)
}
 0x336   : > { %s1255_s6 = smov 128   ;;  %s1256_s16 = smov 8  }
 0x337   : > { %936 = dma.vmem_to_hbm [thread:$0]  (%p1435_p5), %s1507_s7, 256, %s1512_s30, %s708_s28, %s1255_s6, %s1255_s6, %s1256_s16  }
 0x338 PF: > { %s736_s17 = sand.u32 1, %s1229_s18   ;;  %p1585_p12 = scmp.ne.s32.totalorder %s1570_s25, 0 }
 0x339   : > { %p1586_p1 = scmp.ge.s32.totalorder %s1241_s21, 2  ;;  %s737_s29 = scalar_lea.sflag [#allocation4], %s736_s17 }
 0x33b   : > { %p953_p2 = pnand %p1586_p1, %p1585_p12 }
 0x33d   : > { %1224 = dma.done.wait (!%p953_p2), %s737_s29, 256  }
 0x33e   : > { %1226 = vsyncadd (!%p953_p2), %s737_s29, 4294967040  ;;  %p20_p4 = scmp.ge.s32.totalorder %s1400_s8, 4   ;;  %s1587_s18 = smov %s1233_s19 }
 0x33f   : > { %s1588_s19 = smov %s1237_s20  ;;  %s1589_s20 = smov %s1431_s23 }
 0x340   : > { %s1590_s21 = smov %s1400_s8  ;;  %22 = sbr.rel (!%p20_p4) target bundleno = 7 (0x7), region = 97 }
 0x347   :  { %742 = vsyncpa [#allocation3], 1 }
 0x348   :  { %744 = vsyncpa [#allocation3 + $0x1], 1 }
 0x349   :  { %745 = vsyncpa [#allocation6], 1 }
 0x34a   :  { %746 = vsyncpa [#allocation9], 1 }
 0x34b   :  { %747 = vsyncpa [#allocation4], 1 }
 0x34c   :  { %749 = vsyncpa [#allocation4 + $0x1], 1 }

</bundles_post_ra>
